<compile_context>
chip_gen: v7x
topology: tpu7x:2x2x1
jax: 0.10.0
libtpu: 0.0.40
codegen_flags: <defaults>
</compile_context>

<pallas_src>
import functools

import jax
import jax.numpy as jnp
from jax.experimental import pallas as pl
from jax.experimental.pallas import tpu as pltpu


def _dsntli_kernel(x_ref, p_ref, d_ref, pw_ref, s0_ref, out_ref, state_ref,
                   *, t_blk, k_tile):
    """One (K-tile, T-block) tile of DSNT + closed-form leaky integration.

    x_ref:     (t_blk, k_tile*HW)    heatmap block (t_blk steps x k_tile chans)
    p_ref:     (k_tile*HW, 2*k_tile) block-diag DSNT matrix; cols [0,k)=y, [k,2k)=x
    d_ref:     (2, t_blk, t_blk)     per-coord lower-tri decay D[c,i,j]=(1-li_c)^(i-j)
    pw_ref:    (2, t_blk, 1)         carry weights (1-li_c)^(i+1)
    s0_ref:    (2, 1, k_tile)        initial integrator state for this K-tile
    out_ref:   (2, t_blk, k_tile)    integrated coords; 0 = y (co_2), 1 = x (co_1)
    state_ref: (2, 1, k_tile)        VMEM scratch carrying state across T-blocks
    """
    b = pl.program_id(1)

    @pl.when(b == 0)
    def _init():
        state_ref[...] = s0_ref[...]

    # Single-pass DSNT reduction on the MXU: one matmul yields both coordinates
    # of every channel in the tile (f32 accumulation even for bf16 x).
    cos = jnp.dot(x_ref[...], p_ref[...], preferred_element_type=jnp.float32)
    cos_y = cos[:, :k_tile]           # (t_blk, k_tile)  == co_2
    cos_x = cos[:, k_tile:]           # (t_blk, k_tile)  == co_1

    # Closed-form leaky integration within the block (one small MXU matmul per
    # coordinate; kept as two dots so li may differ per coordinate) plus the
    # decayed contribution of the state carried from previous T-blocks.
    out_y = (jnp.dot(d_ref[0], cos_y, preferred_element_type=jnp.float32)
             + pw_ref[0] * state_ref[0])
    out_x = (jnp.dot(d_ref[1], cos_x, preferred_element_type=jnp.float32)
             + pw_ref[1] * state_ref[1])

    out_ref[0] = out_y
    out_ref[1] = out_x

    # Carry the integrator state (last row of the block) to the next T-block.
    state_ref[0] = out_y[t_blk - 1:t_blk, :]
    state_ref[1] = out_x[t_blk - 1:t_blk, :]


def _probs_matrix(H, W):
    """(H*W, 2) DSNT coordinate weights, columns [probs_y, probs_x] (torch-exact)."""
    probs_x = jnp.tile(jnp.linspace(-1.0, 1.0, W, dtype=jnp.float32), H)
    probs_y = jnp.repeat(jnp.linspace(-1.0, 1.0, H, dtype=jnp.float32), W)
    return jnp.stack([probs_y, probs_x], axis=-1)


def _decay_mats(li_tm, t_blk):
    """Per-coordinate lower-triangular decay matrices and carry weights."""
    li = jnp.broadcast_to(jnp.asarray(li_tm, jnp.float32).reshape(-1), (2,))
    dec = 1.0 - li                                                   # (2,)
    i = jnp.arange(t_blk)
    e = i[:, None] - i[None, :]                                      # (t_blk, t_blk)
    d_pow = dec[:, None, None] ** jnp.maximum(e, 0)[None].astype(jnp.float32)
    D = jnp.where(e[None] >= 0, d_pow, 0.0).astype(jnp.float32)      # (2, t_blk, t_blk)
    pw = (dec[:, None, None]
          ** jnp.arange(1, t_blk + 1, dtype=jnp.float32)[None, :, None]
          ).astype(jnp.float32)                                      # (2, t_blk, 1)
    return D, pw


def _vmem_capacity_bytes():
    try:
        return int(pltpu.get_tpu_info().vmem_capacity_bytes)
    except Exception:
        return 64 << 20          # v7x per-core floor; safe on every generation


def _vmem_tile_bytes(t_blk, k_tile, HW, x_itemsize):
    """Conservative double-buffered VMEM footprint of one grid step."""
    x_blk = t_blk * k_tile * HW * x_itemsize
    p_big = k_tile * HW * 2 * k_tile * 4
    d_mat = 2 * t_blk * t_blk * 4
    pw_b = 2 * t_blk * 4
    out_b = 2 * t_blk * k_tile * 4
    s0_b = 2 * k_tile * 4
    scratch = 2 * 8 * 128 * 4
    return 2 * (x_blk + p_big + d_mat + pw_b + out_b + s0_b) + scratch


def _choose_k_tile(K, HW, k_tile):
    if k_tile is not None and K % k_tile == 0 and \
            (k_tile == K or (k_tile * HW) % 128 == 0):
        return int(k_tile)
    # Tile K only when cheap and useful: it gives a "parallel" grid axis
    # (v7x megacore) and bounds the per-step VMEM footprint.
    if K > 8 and K % 8 == 0 and (8 * HW) % 128 == 0:
        return 8
    return K


def _choose_t_block(T, k_tile, HW, x_itemsize, budget, t_block):
    if t_block is not None:
        t_block = int(t_block)
        if t_block >= T:
            return T
        if T % t_block == 0 and t_block % 8 == 0:
            return t_block
    # Largest T-block (divisor of T, multiple of 8, capped at 512 so the decay
    # matrices stay small) whose double-buffered tile fits the VMEM budget.
    cands = {d for d in range(8, min(T, 512) + 1, 8) if T % d == 0}
    if T <= 512 or not cands:
        cands.add(T)
    cands = sorted(cands)
    best = cands[0]
    for c in cands:
        if _vmem_tile_bytes(c, k_tile, HW, x_itemsize) <= budget:
            best = c
    return best


def dsntli_forward(x, resolution, li_tm, state=None, *, t_block=None, k_tile=None):
    """Pallas TPU forward of DSNTLI.

    x: (T, K, H, W) heatmaps, float32 or bfloat16 (supply bf16 upstream to
       halve HBM traffic; the kernel accumulates in f32 either way).
    Returns (out (T, K, 2), state (K, 2)); out[..., 0] = co_2 (y),
    out[..., 1] = co_1 (x), exactly like the PyTorch module.
    """
    T, K, H, W = x.shape
    assert (H, W) == tuple(resolution)
    HW = H * W

    # ---- Tiling (generation-aware) ---------------------------------------
    k_tile = _choose_k_tile(K, HW, k_tile)
    num_kb = K // k_tile
    compute_dtype = x.dtype if x.dtype in (jnp.bfloat16, jnp.float32) else jnp.float32
    itemsize = jnp.dtype(compute_dtype).itemsize

    vmem_cap = _vmem_capacity_bytes()
    budget = int(0.45 * vmem_cap)          # headroom for compiler scratch
    t_blk = _choose_t_block(T, k_tile, HW, itemsize, budget, t_block)
    num_tb = T // t_blk

    # ---- Small resident operands (built once in the wrapper) --------------
    # Natural layout kept: (T, K, H, W) -> (T, K*HW) is a free reshape, and
    # each (t_blk, k_tile*HW) block DMAs as a plain rectangular tile.
    x2 = x.reshape(T, K * HW)
    if x2.dtype != compute_dtype:
        x2 = x2.astype(compute_dtype)      # only for unusual dtypes

    probs = _probs_matrix(H, W)                                        # (HW, 2)
    eye = jnp.eye(k_tile, dtype=jnp.float32)
    # P_big[k*HW + h, c*k_tile + k] = probs[h, c]  (block-diagonal over channels)
    p_big = (eye[:, None, None, :] * probs[None, :, :, None]).reshape(
        k_tile * HW, 2 * k_tile).astype(compute_dtype)

    D, pw = _decay_mats(li_tm, t_blk)                                  # f32

    # Optional external initial state (the torch `state=` argument).
    if state is None:
        s0 = jnp.zeros((2, 1, K), jnp.float32)
    else:
        s = jnp.asarray(state, jnp.float32)
        if s.ndim == 1:                       # (2,), like the torch default
            s0 = jnp.broadcast_to(s[:, None, None], (2, 1, K))
        else:                                 # (K, 2)
            s0 = jnp.transpose(s)[:, None, :]
    s0 = jnp.transpose(s0.reshape(2, 1, num_kb, k_tile), (2, 0, 1, 3))  # (nkb,2,1,kt)

    kernel = functools.partial(_dsntli_kernel, t_blk=t_blk, k_tile=k_tile)

    flops = 2 * T * K * HW + 4 * T * t_blk * K
    bytes_accessed = (x2.size * itemsize + num_kb * 2 * T * k_tile * 4
                      + p_big.size * itemsize + D.size * 4 + pw.size * 4 + s0.size * 4)
    vmem_limit = int(min(vmem_cap * 3 // 4,
                         max(_vmem_tile_bytes(t_blk, k_tile, HW, itemsize)
                             + (8 << 20), 32 << 20)))

    out_raw = pl.pallas_call(
        kernel,
        out_shape=jax.ShapeDtypeStruct((num_kb, 2, T, k_tile), jnp.float32),
        grid_spec=pltpu.PrefetchScalarGridSpec(
            num_scalar_prefetch=0,
            grid=(num_kb, num_tb),
            in_specs=[
                pl.BlockSpec((t_blk, k_tile * HW), lambda kb, b: (b, kb)),
                pl.BlockSpec((k_tile * HW, 2 * k_tile), lambda kb, b: (0, 0)),
                pl.BlockSpec((2, t_blk, t_blk), lambda kb, b: (0, 0, 0)),
                pl.BlockSpec((2, t_blk, 1), lambda kb, b: (0, 0, 0)),
                pl.BlockSpec((None, 2, 1, k_tile), lambda kb, b: (kb, 0, 0, 0)),
            ],
            out_specs=pl.BlockSpec((None, 2, t_blk, k_tile),
                                   lambda kb, b: (kb, 0, b, 0)),
            scratch_shapes=[pltpu.VMEM((2, 1, k_tile), jnp.float32)],
        ),
        compiler_params=pltpu.CompilerParams(
            # K-tile axis is independent (parallel -> v7x megacore); the T axis
            # carries the integrator recurrence (arbitrary -> sequential).
            dimension_semantics=("parallel", "arbitrary"),
            vmem_limit_bytes=vmem_limit,
        ),
        cost_estimate=pl.CostEstimate(flops=int(flops), transcendentals=0,
                                      bytes_accessed=int(bytes_accessed)),
    )(x2, p_big, D, pw, s0)

    # (num_kb, 2, T, k_tile) -> (T, K, 2); channel index = kb*k_tile + k.
    out = jnp.transpose(out_raw, (2, 0, 3, 1)).reshape(T, K, 2)
    return out, out[-1]


def dsntli_reference(x, resolution, li_tm, state=None):
    """Pure-JAX transcription of the PyTorch forward (for verification)."""
    T, K, H, W = x.shape
    probs_x = jnp.tile(jnp.linspace(-1.0, 1.0, W, dtype=jnp.float32), H)
    probs_y = jnp.repeat(jnp.linspace(-1.0, 1.0, H, dtype=jnp.float32), W)
    xf = x.reshape(T, K, H * W).astype(jnp.float32)
    co_1 = (xf * probs_x).sum(-1)
    co_2 = (xf * probs_y).sum(-1)
    cos = jnp.stack((co_2, co_1), -1)                      # (T, K, 2)
    li = jnp.broadcast_to(jnp.asarray(li_tm, jnp.float32).reshape(-1), (2,))
    st = jnp.zeros((2,), jnp.float32) if state is None else jnp.asarray(state, jnp.float32)
    outs = []
    for t in range(T):
        st = st - st * li + cos[t]
        outs.append(st)
    return jnp.stack(outs), st


if __name__ == "__main__":
    H, W = 16, 16
    resolution = (H, W)
    key0, key1 = jax.random.split(jax.random.PRNGKey(0))

    # Config 1: T=16, K=16 -> two K-tiles (parallel axis, v7x megacore path)
    # and two T-blocks (exercises the cross-block integrator carry), with
    # per-coordinate leak rates.
    T, K = 16, 16
    li_tm = jnp.array([0.9, 0.8], dtype=jnp.float32)
    x = jax.random.normal(key0, (T, K, H, W), dtype=jnp.float32)
    out, state = dsntli_forward(x, resolution, li_tm, t_block=8, k_tile=8)
    jax.block_until_ready((out, state))
    ref_out, ref_state = dsntli_reference(x, resolution, li_tm)
    assert out.shape == (T, K, 2) and state.shape == (K, 2)
    assert jnp.allclose(out, ref_out, rtol=1e-4, atol=1e-3), "out mismatch (cfg1)"
    assert jnp.allclose(state, ref_state, rtol=1e-4, atol=1e-3), "state mismatch (cfg1)"

    # Config 2: small K (no K tiling), auto tile sizes, shared leak rate,
    # default zero initial state.
    T2, K2 = 8, 4
    li2 = jnp.array([0.9, 0.9], dtype=jnp.float32)
    x_small = jax.random.normal(key1, (T2, K2, H, W), dtype=jnp.float32)
    out2, state2 = dsntli_forward(x_small, resolution, li2)
    jax.block_until_ready((out2, state2))
    ref_out2, ref_state2 = dsntli_reference(x_small, resolution, li2)
    assert out2.shape == (T2, K2, 2) and state2.shape == (K2, 2)
    assert jnp.allclose(out2, ref_out2, rtol=1e-4, atol=1e-3), "out mismatch (cfg2)"
    assert jnp.allclose(state2, ref_state2, rtol=1e-4, atol=1e-3), "state mismatch (cfg2)"

    print("KERNEL_OK")
</pallas_src>

<mosaic_0001>
module attributes {stable_mosaic.version = 11 : i64} {
  func.func @_dsntli_kernel(%arg0: i32, %arg1: i32, %arg2: memref<8x2048xf32, #tpu.memory_space<vmem>>, %arg3: memref<2048x16xf32, #tpu.memory_space<vmem>>, %arg4: memref<2x8x8xf32, #tpu.memory_space<vmem>>, %arg5: memref<2x8x1xf32, #tpu.memory_space<vmem>>, %arg6: memref<1x2x1x8xf32, #tpu.memory_space<vmem>>, %arg7: memref<1x2x8x8xf32, #tpu.memory_space<vmem>>, %arg8: memref<2x1x8xf32, #tpu.memory_space<vmem>>) attributes {dimension_semantics = [#tpu.dimension_semantics<parallel>, #tpu.dimension_semantics<arbitrary>], iteration_bounds = array<i64: 2, 2>, scalar_prefetch = 0 : i64, scratch_operands = 1 : i64, tpu.core_type = #tpu.core_type<tc>, window_params = [{transform_indices = @transform_0, window_bounds = array<i64: 8, 2048>}, {pipeline_mode = #tpu.pipeline_mode<synchronous>, transform_indices = @transform_1, window_bounds = array<i64: 2048, 16>}, {pipeline_mode = #tpu.pipeline_mode<synchronous>, transform_indices = @transform_2, window_bounds = array<i64: 2, 8, 8>}, {pipeline_mode = #tpu.pipeline_mode<synchronous>, transform_indices = @transform_3, window_bounds = array<i64: 2, 8, 1>}, {transform_indices = @transform_4, window_bounds = array<i64: 1, 2, 1, 8>}, {transform_indices = @transform_5, window_bounds = array<i64: 1, 2, 8, 8>}]} {
    %c0_i32 = arith.constant 0 : i32
    %0 = arith.cmpi eq, %arg1, %c0_i32 : i32
    %1 = arith.extui %0 : i1 to i32
    %c0_i32_0 = arith.constant 0 : i32
    %2 = arith.cmpi ne, %1, %c0_i32_0 : i32
    scf.if %2 {
      %c0_37 = arith.constant 0 : index
      %c0_38 = arith.constant 0 : index
      %c0_39 = arith.constant 0 : index
      %c0_40 = arith.constant 0 : index
      %44 = vector.load %arg6[%c0_37, %c0_38, %c0_39, %c0_40] : memref<1x2x1x8xf32, #tpu.memory_space<vmem>>, vector<1x2x1x8xf32>
      %45 = vector.shape_cast %44 : vector<1x2x1x8xf32> to vector<2x1x8xf32>
      %c0_41 = arith.constant 0 : index
      %c0_42 = arith.constant 0 : index
      %c0_43 = arith.constant 0 : index
      %46 = vector.load %arg8[%c0_41, %c0_42, %c0_43] : memref<2x1x8xf32, #tpu.memory_space<vmem>>, vector<2x1x8xf32>
      tpu.vector_store %arg8[%c0_41, %c0_42, %c0_43], %45 {strides = array<i32>} : memref<2x1x8xf32, #tpu.memory_space<vmem>>, vector<2x1x8xf32>,
    } else {
    }
    %c0 = arith.constant 0 : index
    %c0_1 = arith.constant 0 : index
    %3 = vector.load %arg2[%c0, %c0_1] : memref<8x2048xf32, #tpu.memory_space<vmem>>, vector<8x2048xf32>
    %c0_2 = arith.constant 0 : index
    %c0_3 = arith.constant 0 : index
    %4 = vector.load %arg3[%c0_2, %c0_3] : memref<2048x16xf32, #tpu.memory_space<vmem>>, vector<2048x16xf32>
    %cst = arith.constant dense<0.000000e+00> : vector<8x16xf32>
    %5 = tpu.matmul %3, %4, %cst {dimension_numbers = #tpu.dot_dimension_numbers<[1], [0], [0], [1], [0, 0, 1, 1], [], []>} : vector<8x2048xf32>, vector<2048x16xf32>, vector<8x16xf32> -> vector<8x16xf32>
    %6 = vector.extract_strided_slice %5 {offsets = [0, 0], sizes = [8, 8], strides = [1, 1]} : vector<8x16xf32> to vector<8x8xf32>
    %7 = vector.extract_strided_slice %5 {offsets = [0, 8], sizes = [8, 8], strides = [1, 1]} : vector<8x16xf32> to vector<8x8xf32>
    %c0_4 = arith.constant 0 : index
    %c0_5 = arith.constant 0 : index
    %c0_6 = arith.constant 0 : index
    %8 = vector.load %arg4[%c0_4, %c0_5, %c0_6] : memref<2x8x8xf32, #tpu.memory_space<vmem>>, vector<1x8x8xf32>
    %9 = vector.shape_cast %8 : vector<1x8x8xf32> to vector<8x8xf32>
    %cst_7 = arith.constant dense<0.000000e+00> : vector<8x8xf32>
    %10 = tpu.matmul %9, %6, %cst_7 {dimension_numbers = #tpu.dot_dimension_numbers<[1], [0], [0], [1], [0, 0, 1, 1], [], []>} : vector<8x8xf32>, vector<8x8xf32>, vector<8x8xf32> -> vector<8x8xf32>
    %c0_8 = arith.constant 0 : index
    %c0_9 = arith.constant 0 : index
    %c0_10 = arith.constant 0 : index
    %11 = vector.load %arg5[%c0_8, %c0_9, %c0_10] : memref<2x8x1xf32, #tpu.memory_space<vmem>>, vector<1x8x1xf32>
    %12 = vector.shape_cast %11 : vector<1x8x1xf32> to vector<8x1xf32>
    %c0_11 = arith.constant 0 : index
    %c0_12 = arith.constant 0 : index
    %c0_13 = arith.constant 0 : index
    %13 = vector.load %arg8[%c0_11, %c0_12, %c0_13] : memref<2x1x8xf32, #tpu.memory_space<vmem>>, vector<1x1x8xf32>
    %14 = vector.shape_cast %13 : vector<1x1x8xf32> to vector<1x8xf32>
    %15 = vector.broadcast %12 : vector<8x1xf32> to vector<8x8xf32>
    %16 = vector.broadcast %14 : vector<1x8xf32> to vector<8x8xf32>
    %17 = arith.mulf %15, %16 : vector<8x8xf32>
    %18 = arith.addf %10, %17 : vector<8x8xf32>
    %c1 = arith.constant 1 : index
    %c0_14 = arith.constant 0 : index
    %c0_15 = arith.constant 0 : index
    %19 = vector.load %arg4[%c1, %c0_14, %c0_15] : memref<2x8x8xf32, #tpu.memory_space<vmem>>, vector<1x8x8xf32>
    %20 = vector.shape_cast %19 : vector<1x8x8xf32> to vector<8x8xf32>
    %cst_16 = arith.constant dense<0.000000e+00> : vector<8x8xf32>
    %21 = tpu.matmul %20, %7, %cst_16 {dimension_numbers = #tpu.dot_dimension_numbers<[1], [0], [0], [1], [0, 0, 1, 1], [], []>} : vector<8x8xf32>, vector<8x8xf32>, vector<8x8xf32> -> vector<8x8xf32>
    %c1_17 = arith.constant 1 : index
    %c0_18 = arith.constant 0 : index
    %c0_19 = arith.constant 0 : index
    %22 = vector.load %arg5[%c1_17, %c0_18, %c0_19] : memref<2x8x1xf32, #tpu.memory_space<vmem>>, vector<1x8x1xf32>
    %23 = vector.shape_cast %22 : vector<1x8x1xf32> to vector<8x1xf32>
    %c1_20 = arith.constant 1 : index
    %c0_21 = arith.constant 0 : index
    %c0_22 = arith.constant 0 : index
    %24 = vector.load %arg8[%c1_20, %c0_21, %c0_22] : memref<2x1x8xf32, #tpu.memory_space<vmem>>, vector<1x1x8xf32>
    %25 = vector.shape_cast %24 : vector<1x1x8xf32> to vector<1x8xf32>
    %26 = vector.broadcast %23 : vector<8x1xf32> to vector<8x8xf32>
    %27 = vector.broadcast %25 : vector<1x8xf32> to vector<8x8xf32>
    %28 = arith.mulf %26, %27 : vector<8x8xf32>
    %29 = arith.addf %21, %28 : vector<8x8xf32>
    %c0_23 = arith.constant 0 : index
    %c0_24 = arith.constant 0 : index
    %c0_25 = arith.constant 0 : index
    %c0_26 = arith.constant 0 : index
    %30 = vector.load %arg7[%c0_23, %c0_24, %c0_25, %c0_26] : memref<1x2x8x8xf32, #tpu.memory_space<vmem>>, vector<1x1x8x8xf32>
    %31 = vector.shape_cast %30 : vector<1x1x8x8xf32> to vector<8x8xf32>
    %32 = vector.shape_cast %18 : vector<8x8xf32> to vector<1x1x8x8xf32>
    tpu.vector_store %arg7[%c0_23, %c0_24, %c0_25, %c0_26], %32 {strides = array<i32>} : memref<1x2x8x8xf32, #tpu.memory_space<vmem>>, vector<1x1x8x8xf32>,
    %c0_27 = arith.constant 0 : index
    %c1_28 = arith.constant 1 : index
    %c0_29 = arith.constant 0 : index
    %c0_30 = arith.constant 0 : index
    %33 = vector.load %arg7[%c0_27, %c1_28, %c0_29, %c0_30] : memref<1x2x8x8xf32, #tpu.memory_space<vmem>>, vector<1x1x8x8xf32>
    %34 = vector.shape_cast %33 : vector<1x1x8x8xf32> to vector<8x8xf32>
    %35 = vector.shape_cast %29 : vector<8x8xf32> to vector<1x1x8x8xf32>
    tpu.vector_store %arg7[%c0_27, %c1_28, %c0_29, %c0_30], %35 {strides = array<i32>} : memref<1x2x8x8xf32, #tpu.memory_space<vmem>>, vector<1x1x8x8xf32>,
    %36 = vector.extract_strided_slice %18 {offsets = [7, 0], sizes = [1, 8], strides = [1, 1]} : vector<8x8xf32> to vector<1x8xf32>
    %c0_31 = arith.constant 0 : index
    %c0_32 = arith.constant 0 : index
    %c0_33 = arith.constant 0 : index
    %37 = vector.load %arg8[%c0_31, %c0_32, %c0_33] : memref<2x1x8xf32, #tpu.memory_space<vmem>>, vector<1x1x8xf32>
    %38 = vector.shape_cast %37 : vector<1x1x8xf32> to vector<1x8xf32>
    %39 = vector.shape_cast %36 : vector<1x8xf32> to vector<1x1x8xf32>
    tpu.vector_store %arg8[%c0_31, %c0_32, %c0_33], %39 {strides = array<i32>} : memref<2x1x8xf32, #tpu.memory_space<vmem>>, vector<1x1x8xf32>,
    %40 = vector.extract_strided_slice %29 {offsets = [7, 0], sizes = [1, 8], strides = [1, 1]} : vector<8x8xf32> to vector<1x8xf32>
    %c1_34 = arith.constant 1 : index
    %c0_35 = arith.constant 0 : index
    %c0_36 = arith.constant 0 : index
    %41 = vector.load %arg8[%c1_34, %c0_35, %c0_36] : memref<2x1x8xf32, #tpu.memory_space<vmem>>, vector<1x1x8xf32>
    %42 = vector.shape_cast %41 : vector<1x1x8xf32> to vector<1x8xf32>
    %43 = vector.shape_cast %40 : vector<1x8xf32> to vector<1x1x8xf32>
    tpu.vector_store %arg8[%c1_34, %c0_35, %c0_36], %43 {strides = array<i32>} : memref<2x1x8xf32, #tpu.memory_space<vmem>>, vector<1x1x8xf32>,
    return
  }
  func.func @transform_0(%arg0: i32, %arg1: i32) -> (i32, i32) {
    %c0_i32 = arith.constant 0 : i32
    return %arg1, %arg0 : i32, i32
  }
  func.func @transform_1(%arg0: i32, %arg1: i32) -> (i32, i32) {
    %c0_i32 = arith.constant 0 : i32
    %c0_i32_0 = arith.constant 0 : i32
    %c0_i32_1 = arith.constant 0 : i32
    return %c0_i32, %c0_i32_0 : i32, i32
  }
  func.func @transform_2(%arg0: i32, %arg1: i32) -> (i32, i32, i32) {
    %c0_i32 = arith.constant 0 : i32
    %c0_i32_0 = arith.constant 0 : i32
    %c0_i32_1 = arith.constant 0 : i32
    %c0_i32_2 = arith.constant 0 : i32
    return %c0_i32, %c0_i32_0, %c0_i32_1 : i32, i32, i32
  }
  func.func @transform_3(%arg0: i32, %arg1: i32) -> (i32, i32, i32) {
    %c0_i32 = arith.constant 0 : i32
    %c0_i32_0 = arith.constant 0 : i32
    %c0_i32_1 = arith.constant 0 : i32
    %c0_i32_2 = arith.constant 0 : i32
    return %c0_i32, %c0_i32_0, %c0_i32_1 : i32, i32, i32
  }
  func.func @transform_4(%arg0: i32, %arg1: i32) -> (i32, i32, i32, i32) {
    %c0_i32 = arith.constant 0 : i32
    %c0_i32_0 = arith.constant 0 : i32
    %c0_i32_1 = arith.constant 0 : i32
    %c0_i32_2 = arith.constant 0 : i32
    return %arg0, %c0_i32, %c0_i32_0, %c0_i32_1 : i32, i32, i32, i32
  }
  func.func @transform_5(%arg0: i32, %arg1: i32) -> (i32, i32, i32, i32) {
    %c0_i32 = arith.constant 0 : i32
    %c0_i32_0 = arith.constant 0 : i32
    %c0_i32_1 = arith.constant 0 : i32
    return %arg0, %c0_i32, %arg1, %c0_i32_0 : i32, i32, i32, i32
  }
}

</mosaic_0001>

<bundles_post_ra>
// kernel: tpu_custom_call.1
= control target key start
LH: loop header
LB: loop body
LE: loop exit
PB: predicated region body
PF: predicated region fallthrough
CT: control target
= control target key end

     0   :  { %s2151_s18 = smov 0   ;;  %s2153_s19 = smov 0   ;;  %s3059_s0 = inlined_call_operand.vmem [shape: f32[16,4096], index: 0, kind: input, shape index: {}]   ;;  %s3060_s1 = inlined_call_operand.vmem [shape: f32[2048,16], index: 1, kind: input, shape index: {}]   ;;  %s3061_s2 = inlined_call_operand.vmem [shape: f32[2,8,8], index: 2, kind: input, shape index: {}]   ;;  %s3062_s3 = inlined_call_operand.vmem [shape: f32[2,8,1], index: 3, kind: input, shape index: {}]   ;;  %s3063_s4 = inlined_call_operand.vmem [shape: f32[2,2,1,8], index: 4, kind: input, shape index: {}]   ;;  %s3064_s5 = inlined_call_operand.vmem [shape: f32[2,2,16,8], index: 5, kind: output, shape index: {}]  }
   0x1   :  { %s2155_s20 = smov 0   ;;  %s2157_s21 = smov 0  }
   0x2   :  { %s2159_s22 = smov 0   ;;  %s2161_s23 = smov 0  }
   0x3   :  { %s2163_s24 = smov 0  }
   0x4 LB: > { %s24_s25 = sadd.s32 1, %s2107_s22  ;;  %s27_s26 = sadd.s32 1, %s2111_s23  ;;  %s2115_s24 = sphi %s2163_s24, %s15_s24   ;;  %s2111_s23 = sphi %s2161_s23, %s3071_s23   ;;  %s2107_s22 = sphi %s2159_s22, %s3070_s22   ;;  %s2103_s21 = sphi %s2157_s21, %s3069_s21   ;;  %s2099_s20 = sphi %s2155_s20, %s3068_s20   ;;  %s2095_s19 = sphi %s2153_s19, %s3067_s19   ;;  %s2091_s18 = sphi %s2151_s18, %s3066_s18  }
   0x5   : > { %p25_p0 = scmp.ge.s32.totalorder %s24_s25, 2  ;;  %s1426_s27 = sadd.s32 4294967295, %s2115_s24  }
   0x6   : > { %p163_p1 = scmp.ne.s32.totalorder %s2095_s19, %s2091_s18  ;;  %p164_p2 = scmp.eq.s32.totalorder %s1426_s27, 3 }
   0x7   : > { %s3073_s25 = smov (%p25_p0, %s24_s25), 0  ;;  %s3075_s26 = smov (!%p25_p0, %s27_s26), %s2111_s23 }
   0x8   : > { %s149_s28 = ssub.s32 %s2107_s22, %s3073_s25  ;;  %p29_p3 = scmp.ge.s32.totalorder %s3075_s26, 2 }
   0x9   : > { %p1430_p4 = scmp.ge.s32.totalorder %s2115_s24, 1  ;;  %p2197_p5 = por %p164_p2, %p163_p1 }
   0xa   : > { %p217_p6 = scmp.lt.s32.totalorder %s2115_s24, 5  ;;  %s3077_s26 = smov (%p29_p3, %s3075_s26), 0 }
   0xb   : > { %s148_s30 = ssub.s32 %s2111_s23, %s3077_s26  ;;  %s153_s7 = sadd.s32 1, %s2095_s19 }
   0xc   : > { %p218_p7 = pnand %p1430_p4, %p217_p6  ;;  %s150_s6 = sor.u32 %s149_s28, %s148_s30 }
   0xd   : > { %p151_p8 = scmp.eq.s32.totalorder %s150_s6, 0  ;;  %s249_s9 = sand.u32 (!%p218_p7), 1, %s2091_s18  }
   0xe   : > { %221 = sbr.rel (%p218_p7) target bundleno = 723 (0x2d3), region = 40  ;;  %s1432_s10 = sshll.u32 (!%p218_p7), %s2103_s21, 4 }
   0xf   : > { %s2208_s8 = scalar_select %p151_p8, %s2095_s19, %s153_s7  }
  0x10   : > { %s1431_s11 = sshll.u32 (!%p218_p7), %s249_s9, 4  ;;  %p253_p9 = scmp.lt.s32.totalorder (!%p218_p7), %s2099_s20, 1 }
  0x11   : > { %p255_p10 = scmp.lt.s32.totalorder (!%p218_p7), %s1432_s10, 31  ;;  %p262_p11 = scmp.lt.s32.totalorder (!%p218_p7), %s2103_s21, 1 }
  0x12   : > { %s2224_s9 = scalar_lea.vmem (!%p218_p7), [#allocation3], %s1431_s11  ;;  %p1436_p12 = scmp.ne.s32.totalorder (!%p218_p7), %s2099_s20, 0 }
  0x15   : > { %s254_s12 = scalar_select %p253_p9, %s2099_s20, 1 }
  0x16   : > { %s3079_s10 = smov (!%p255_p10, %s1432_s10), 31  ;;  %vm272_vm0 = vcmask (!%p1436_p12), 57344  }
  0x17   : > { %s1433_s13 = sshll.u32 %s254_s12, 5 }
  0x18   : > { %s258_s14 = sadd.s32 %s1433_s13, %s3079_s10  ;;  %269 = sbr.rel (%p1436_p12) target bundleno = 33 (0x21), region = 44 }
  0x19   : > { %s1434_s15 = sshll.u32 %s258_s14, 3 }
  0x1a   : > { %s2218_s27 = scalar_lea.vmem %s3059_s0, %s1434_s15 }
  0x1b   : > { %s263_s28 = scalar_select %p262_p11, %s2103_s21, 1 }
  0x1d   : > { %s1435_s30 = sshll.u32 %s263_s28, 1 }
  0x1e   : > { %s265_s18 = scalar_lea.vmem %s3063_s4, %s1435_s30 }
  0x1f   : > { %v270_v0 = vld [vmem:[%s265_s18] sm:$0x1]  ;;  %v271_v1 = vld [vmem:[%s265_s18 + $0x1] sm:$0x1] }
  0x20   : > { %273 = vst.msk [vmem:[#allocation2] sm:$0x1] %vm272_vm0, %v270_v0  ;;  %274 = vst.msk [vmem:[#allocation2 + $0x1] sm:$0x1] %vm272_vm0, %v271_v1 }
  0x21 PF: > { %v307_v2 = vld [vmem:[%s3060_s1 + $0x80] sm:$0xff]  ;;  %v308_v3 = vld [vmem:[%s3060_s1 + $0x88] sm:$0xff]  ;;  %v309_v13 = vld [vmem:[%s3060_s1 + $0x90] sm:$0xff]  ;;  %vm2118_vm1 = vmmov 0   ;;  %vm1122_vm2 = vcmask 64512   ;;  %s2120_s28 = smov 120  }
  0x22   : > { %v339_v4 = vld [vmem:[%s3060_s1 + $0x180] sm:$0xff]  ;;  %v1743_v5 = vpack.c.bf16 %v308_v3, %v307_v2  ;;  %v340_v6 = vld [vmem:[%s3060_s1 + $0x188] sm:$0xff]  ;;  %v310_v15 = vld [vmem:[%s3060_s1 + $0x98] sm:$0xff]  ;;  %vm1294_vm3 = vcmask 64519   ;;  %s1445_s10 = sshll.u32 (%p2197_p5), %s2103_s21, 2 }
  0x23   : > { %v291_v7 = vld [vmem:[%s3060_s1] sm:$0xff]  ;;  %v292_v8 = vld [vmem:[%s3060_s1 + $0x8] sm:$0xff]  ;;  %v1775_v9 = vpack.c.bf16 %v340_v6, %v339_v4  ;;  %v341_v16 = vld [vmem:[%s3060_s1 + $0x190] sm:$0xff]  ;;  %v1747_v18 = vpack.c.bf16 %v310_v15, %v309_v13  ;;  %s1305_s12 = sadd.s32 (%p2197_p5), %s2099_s20, %s1445_s10 }
  0x24   : > { %v1745_v10 = vpack.c.bf16 %v292_v8, %v291_v7  ;;  %v323_v11 = vld [vmem:[%s3060_s1 + $0x100] sm:$0xff]  ;;  %v324_v12 = vld [vmem:[%s3060_s1 + $0x108] sm:$0xff]  ;;  %1744 = vmatprep.subr.bf16.mxu0 %v1743_v5  ;;  %v342_v17 = vld [vmem:[%s3060_s1 + $0x198] sm:$0xff]  ;;  %s1446_s13 = sshll.u32 (%p2197_p5), %s1305_s12, 3 }
  0x25   : > { %v1777_v14 = vpack.c.bf16 %v324_v12, %v323_v11  ;;  %1776 = vmatprep.subr.bf16.mxu1 %v1775_v9  ;;  %v1779_v19 = vpack.c.bf16 %v342_v17, %v341_v16  ;;  %v293_v20 = vld [vmem:[%s3060_s1 + $0x10] sm:$0xff]  ;;  %v294_v21 = vld [vmem:[%s3060_s1 + $0x18] sm:$0xff]  ;;  %v311_v25 = vld [vmem:[%s3060_s1 + $0xa0] sm:$0xff] }
  0x26   : > { %1746 = vmatpush3.bf16.msra.mxu0 %v1745_v10  ;;  %v325_v22 = vld [vmem:[%s3060_s1 + $0x110] sm:$0xff]  ;;  %v1749_v23 = vpack.c.bf16 %v294_v21, %v293_v20  ;;  %v326_v24 = vld [vmem:[%s3060_s1 + $0x118] sm:$0xff]  ;;  %v312_v26 = vld [vmem:[%s3060_s1 + $0xa8] sm:$0xff] }
  0x27   : > { %1778 = vmatpush3.bf16.msra.mxu1 %v1777_v14  ;;  %1748 = vmatprep.subr.bf16.mxu0 %v1747_v18  ;;  %v1781_v27 = vpack.c.bf16 %v326_v24, %v325_v22  ;;  %v1751_v28 = vpack.c.bf16 %v312_v26, %v311_v25  ;;  %v343_v29 = vld [vmem:[%s3060_s1 + $0x1a0] sm:$0xff]  ;;  %v344_v30 = vld [vmem:[%s3060_s1 + $0x1a8] sm:$0xff]  ;;  %v313_v37 = vld [vmem:[%s3060_s1 + $0xb0] sm:$0xff] }
  0x28   : > { %1780 = vmatprep.subr.bf16.mxu1 %v1779_v19  ;;  %v295_v31 = vld [vmem:[%s3060_s1 + $0x20] sm:$0xff]  ;;  %v1783_v32 = vpack.c.bf16 %v344_v30, %v343_v29  ;;  %v296_v33 = vld [vmem:[%s3060_s1 + $0x28] sm:$0xff]  ;;  %v314_v38 = vld [vmem:[%s3060_s1 + $0xb8] sm:$0xff] }
  0x29   : > { %v327_v34 = vld [vmem:[%s3060_s1 + $0x120] sm:$0xff]  ;;  %v328_v35 = vld [vmem:[%s3060_s1 + $0x128] sm:$0xff]  ;;  %v1753_v36 = vpack.c.bf16 %v296_v33, %v295_v31  ;;  %v345_v39 = vld [vmem:[%s3060_s1 + $0x1b0] sm:$0xff]  ;;  %v1755_v41 = vpack.c.bf16 %v314_v38, %v313_v37 }
  0x2a   : > { %1750 = vmatpush3.bf16.msra.mxu0 %v1749_v23  ;;  %v1785_v40 = vpack.c.bf16 %v328_v35, %v327_v34  ;;  %v346_v42 = vld [vmem:[%s3060_s1 + $0x1b8] sm:$0xff]  ;;  %v297_v43 = vld [vmem:[%s3060_s1 + $0x30] sm:$0xff]  ;;  %v315_v48 = vld [vmem:[%s3060_s1 + $0xc0] sm:$0xff] }
  0x2b   : > { %1782 = vmatpush3.bf16.msra.mxu1 %v1781_v27  ;;  %1752 = vmatprep.subr.bf16.mxu0 %v1751_v28  ;;  %v298_v44 = vld [vmem:[%s3060_s1 + $0x38] sm:$0xff]  ;;  %v1787_v45 = vpack.c.bf16 %v346_v42, %v345_v39  ;;  %v329_v46 = vld [vmem:[%s3060_s1 + $0x130] sm:$0xff]  ;;  %v316_v49 = vld [vmem:[%s3060_s1 + $0xc8] sm:$0xff] }
  0x2c   : > { %1784 = vmatprep.subr.bf16.mxu1 %v1783_v32  ;;  %v330_v47 = vld [vmem:[%s3060_s1 + $0x138] sm:$0xff]  ;;  %v347_v50 = vld [vmem:[%s3060_s1 + $0x1c0] sm:$0xff]  ;;  %v348_v51 = vld [vmem:[%s3060_s1 + $0x1c8] sm:$0xff]  ;;  %v1757_v52 = vpack.c.bf16 %v298_v44, %v297_v43  ;;  %v1759_v54 = vpack.c.bf16 %v316_v49, %v315_v48 }
  0x2d   : > { %v1789_v53 = vpack.c.bf16 %v330_v47, %v329_v46  ;;  %v299_v55 = vld [vmem:[%s3060_s1 + $0x40] sm:$0xff]  ;;  %v300_v56 = vld [vmem:[%s3060_s1 + $0x48] sm:$0xff]  ;;  %v1791_v58 = vpack.c.bf16 %v348_v51, %v347_v50  ;;  %v317_v60 = vld [vmem:[%s3060_s1 + $0xd0] sm:$0xff] }
  0x2e   : > { %1754 = vmatpush3.bf16.msra.mxu0 %v1753_v36  ;;  %v331_v57 = vld [vmem:[%s3060_s1 + $0x140] sm:$0xff]  ;;  %v332_v59 = vld [vmem:[%s3060_s1 + $0x148] sm:$0xff]  ;;  %v318_v61 = vld [vmem:[%s3060_s1 + $0xd8] sm:$0xff]  ;;  %v1761_v0 = vpack.c.bf16 %v300_v56, %v299_v55 }
  0x2f   : > { %1786 = vmatpush3.bf16.msra.mxu1 %v1785_v40  ;;  %1756 = vmatprep.subr.bf16.mxu0 %v1755_v41  ;;  %v349_v62 = vld [vmem:[%s3060_s1 + $0x1d0] sm:$0xff]  ;;  %v350_v63 = vld [vmem:[%s3060_s1 + $0x1d8] sm:$0xff]  ;;  %v1793_v1 = vpack.c.bf16 %v332_v59, %v331_v57  ;;  %v1763_v2 = vpack.c.bf16 %v318_v61, %v317_v60  ;;  %v319_v8 = vld [vmem:[%s3060_s1 + $0xe0] sm:$0xff] }
  0x30   : > { %1788 = vmatprep.subr.bf16.mxu1 %v1787_v45  ;;  %v301_v3 = vld [vmem:[%s3060_s1 + $0x50] sm:$0xff]  ;;  %v302_v4 = vld [vmem:[%s3060_s1 + $0x58] sm:$0xff]  ;;  %v1795_v6 = vpack.c.bf16 %v350_v63, %v349_v62  ;;  %v320_v9 = vld [vmem:[%s3060_s1 + $0xe8] sm:$0xff] }
  0x31   : > { %v333_v5 = vld [vmem:[%s3060_s1 + $0x150] sm:$0xff]  ;;  %v334_v7 = vld [vmem:[%s3060_s1 + $0x158] sm:$0xff]  ;;  %v351_v10 = vld [vmem:[%s3060_s1 + $0x1e0] sm:$0xff]  ;;  %v1765_v12 = vpack.c.bf16 %v302_v4, %v301_v3  ;;  %v1767_v16 = vpack.c.bf16 %v320_v9, %v319_v8 }
  0x32   : > { %1758 = vmatpush3.bf16.msra.mxu0 %v1757_v52  ;;  %v352_v11 = vld [vmem:[%s3060_s1 + $0x1e8] sm:$0xff]  ;;  %v303_v13 = vld [vmem:[%s3060_s1 + $0x60] sm:$0xff]  ;;  %v1797_v15 = vpack.c.bf16 %v334_v7, %v333_v5  ;;  %v278_v19 = vld [vmem:[%s2218_s27 + $0x18] sm:$0xff] }
  0x33   : > { %1790 = vmatpush3.bf16.msra.mxu1 %v1789_v53  ;;  %1760 = vmatprep.subr.bf16.mxu0 %v1759_v54  ;;  %v304_v14 = vld [vmem:[%s3060_s1 + $0x68] sm:$0xff]  ;;  %v335_v17 = vld [vmem:[%s3060_s1 + $0x160] sm:$0xff]  ;;  %v1799_v20 = vpack.c.bf16 %v352_v11, %v351_v10  ;;  %v321_v22 = vld [vmem:[%s3060_s1 + $0xf0] sm:$0xff] }
  0x34   : > { %1792 = vmatprep.subr.bf16.mxu1 %v1791_v58  ;;  %v276_v18 = vld [vmem:[%s2218_s27 + $0x8] sm:$0xff]  ;;  %v322_v23 = vld [vmem:[%s3060_s1 + $0xf8] sm:$0xff]  ;;  %v353_v24 = vld [vmem:[%s3060_s1 + $0x1f0] sm:$0xff]  ;;  %681 = vmatprep.mubr.f32.mxu1 %v278_v19  ;;  %v1769_v26 = vpack.c.bf16 %v304_v14, %v303_v13 }
  0x35   : > { %v336_v21 = vld [vmem:[%s3060_s1 + $0x168] sm:$0xff]  ;;  %611 = vmatprep.mubr.f32.mxu0 %v276_v18  ;;  %v354_v25 = vld [vmem:[%s3060_s1 + $0x1f8] sm:$0xff]  ;;  %v1771_v28 = vpack.c.bf16 %v322_v23, %v321_v22  ;;  %v305_v29 = vld [vmem:[%s3060_s1 + $0x70] sm:$0xff] }
  0x36   : > { %1762 = vmatpush3.bf16.msra.mxu0 %v1761_v0  ;;  %v1801_v27 = vpack.c.bf16 %v336_v21, %v335_v17  ;;  %v306_v30 = vld [vmem:[%s3060_s1 + $0x78] sm:$0xff]  ;;  %v337_v31 = vld [vmem:[%s3060_s1 + $0x170] sm:$0xff]  ;;  %v1803_v32 = vpack.c.bf16 %v354_v25, %v353_v24  ;;  %v371_v34 = vld [vmem:[%s3060_s1 + $0x280] sm:$0xff] }
  0x37   : > { %1794 = vmatpush3.bf16.msra.mxu1 %v1793_v1  ;;  %1764 = vmatprep.subr.bf16.mxu0 %v1763_v2  ;;  %v338_v33 = vld [vmem:[%s3060_s1 + $0x178] sm:$0xff]  ;;  %v372_v35 = vld [vmem:[%s3060_s1 + $0x288] sm:$0xff]  ;;  %v403_v36 = vld [vmem:[%s3060_s1 + $0x380] sm:$0xff]  ;;  %v1773_v38 = vpack.c.bf16 %v306_v30, %v305_v29 }
  0x38   : > { %1796 = vmatprep.subr.bf16.mxu1 %v1795_v6  ;;  %v404_v37 = vld [vmem:[%s3060_s1 + $0x388] sm:$0xff]  ;;  %v1805_v39 = vpack.c.bf16 %v338_v33, %v337_v31  ;;  %v1807_v40 = vpack.c.bf16 %v372_v35, %v371_v34  ;;  %v355_v41 = vld [vmem:[%s3060_s1 + $0x200] sm:$0xff]  ;;  %v373_v46 = vld [vmem:[%s3060_s1 + $0x290] sm:$0xff] }
  0x39   : > { %v356_v42 = vld [vmem:[%s3060_s1 + $0x208] sm:$0xff]  ;;  %v387_v43 = vld [vmem:[%s3060_s1 + $0x300] sm:$0xff]  ;;  %v1839_v44 = vpack.c.bf16 %v404_v37, %v403_v36  ;;  %v374_v47 = vld [vmem:[%s3060_s1 + $0x298] sm:$0xff] }
  0x3a   : > { %1766 = vmatpush3.bf16.msra.mxu0 %v1765_v12  ;;  %v388_v45 = vld [vmem:[%s3060_s1 + $0x308] sm:$0xff]  ;;  %v405_v48 = vld [vmem:[%s3060_s1 + $0x390] sm:$0xff]  ;;  %v406_v49 = vld [vmem:[%s3060_s1 + $0x398] sm:$0xff]  ;;  %v1809_v52 = vpack.c.bf16 %v356_v42, %v355_v41  ;;  %v1811_v54 = vpack.c.bf16 %v374_v47, %v373_v46 }
  0x3b   : > { %1798 = vmatpush3.bf16.msra.mxu1 %v1797_v15  ;;  %1768 = vmatprep.subr.bf16.mxu0 %v1767_v16  ;;  %v275_v50 = vld [vmem:[%s2218_s27] sm:$0xff]  ;;  %v277_v51 = vld [vmem:[%s2218_s27 + $0x10] sm:$0xff]  ;;  %v1841_v53 = vpack.c.bf16 %v388_v45, %v387_v43  ;;  %v358_v56 = vld [vmem:[%s3060_s1 + $0x218] sm:$0xff]  ;;  %v1843_v58 = vpack.c.bf16 %v406_v49, %v405_v48 }
  0x3c   : > { %1800 = vmatprep.subr.bf16.mxu1 %v1799_v20  ;;  %v357_v55 = vld [vmem:[%s3060_s1 + $0x210] sm:$0xff]  ;;  %v390_v59 = vld [vmem:[%s3060_s1 + $0x318] sm:$0xff]  ;;  %v375_v60 = vld [vmem:[%s3060_s1 + $0x2a0] sm:$0xff] }
  0x3d   : > { %v389_v57 = vld [vmem:[%s3060_s1 + $0x310] sm:$0xff]  ;;  %v376_v61 = vld [vmem:[%s3060_s1 + $0x2a8] sm:$0xff]  ;;  %v407_v62 = vld [vmem:[%s3060_s1 + $0x3a0] sm:$0xff]  ;;  %v1813_v0 = vpack.c.bf16 %v358_v56, %v357_v55 }
  0x3e   : > { %1770 = vmatpush3.bf16.msra.mxu0 %v1769_v26  ;;  %v408_v63 = vld [vmem:[%s3060_s1 + $0x3a8] sm:$0xff]  ;;  %v1845_v1 = vpack.c.bf16 %v390_v59, %v389_v57  ;;  %v1815_v2 = vpack.c.bf16 %v376_v61, %v375_v60  ;;  %v359_v3 = vld [vmem:[%s3060_s1 + $0x220] sm:$0xff]  ;;  %v377_v8 = vld [vmem:[%s3060_s1 + $0x2b0] sm:$0xff] }
  0x3f   : > { %1802 = vmatpush3.bf16.msra.mxu1 %v1801_v27  ;;  %1772 = vmatprep.subr.bf16.mxu0 %v1771_v28  ;;  %v360_v4 = vld [vmem:[%s3060_s1 + $0x228] sm:$0xff]  ;;  %v391_v5 = vld [vmem:[%s3060_s1 + $0x320] sm:$0xff]  ;;  %v1847_v6 = vpack.c.bf16 %v408_v63, %v407_v62  ;;  %v378_v9 = vld [vmem:[%s3060_s1 + $0x2b8] sm:$0xff] }
  0x40   : > { %1804 = vmatprep.subr.bf16.mxu1 %v1803_v32  ;;  %v392_v7 = vld [vmem:[%s3060_s1 + $0x328] sm:$0xff]  ;;  %v409_v10 = vld [vmem:[%s3060_s1 + $0x3b0] sm:$0xff]  ;;  %v410_v11 = vld [vmem:[%s3060_s1 + $0x3b8] sm:$0xff]  ;;  %v1817_v12 = vpack.c.bf16 %v360_v4, %v359_v3  ;;  %v1819_v14 = vpack.c.bf16 %v378_v9, %v377_v8 }
  0x41   : > { %v1849_v13 = vpack.c.bf16 %v392_v7, %v391_v5  ;;  %v361_v15 = vld [vmem:[%s3060_s1 + $0x230] sm:$0xff]  ;;  %v362_v16 = vld [vmem:[%s3060_s1 + $0x238] sm:$0xff]  ;;  %v1851_v18 = vpack.c.bf16 %v410_v11, %v409_v10  ;;  %v379_v20 = vld [vmem:[%s3060_s1 + $0x2c0] sm:$0xff] }
  0x42   : > { %1774 = vmatpush3.bf16.msra.mxu0 %v1773_v38  ;;  %v393_v17 = vld [vmem:[%s3060_s1 + $0x330] sm:$0xff]  ;;  %v394_v19 = vld [vmem:[%s3060_s1 + $0x338] sm:$0xff]  ;;  %v380_v21 = vld [vmem:[%s3060_s1 + $0x2c8] sm:$0xff]  ;;  %v1821_v24 = vpack.c.bf16 %v362_v16, %v361_v15 }
  0x43   : > { %1806 = vmatpush3.bf16.msra.mxu1 %v1805_v39  ;;  %1808 = vmatprep.subr.bf16.mxu0 %v1807_v40  ;;  %v411_v22 = vld [vmem:[%s3060_s1 + $0x3c0] sm:$0xff]  ;;  %v412_v23 = vld [vmem:[%s3060_s1 + $0x3c8] sm:$0xff]  ;;  %v1853_v27 = vpack.c.bf16 %v394_v19, %v393_v17  ;;  %v1823_v28 = vpack.c.bf16 %v380_v21, %v379_v20  ;;  %v282_v31 = vld [vmem:[%s2218_s27 + $0x38] sm:$0xff] }
  0x44   : > { %1840 = vmatprep.subr.bf16.mxu1 %v1839_v44  ;;  %v363_v25 = vld [vmem:[%s3060_s1 + $0x240] sm:$0xff]  ;;  %v280_v26 = vld [vmem:[%s2218_s27 + $0x28] sm:$0xff]  ;;  %v1855_v32 = vpack.c.bf16 %v412_v23, %v411_v22  ;;  %v381_v34 = vld [vmem:[%s3060_s1 + $0x2d0] sm:$0xff] }
  0x45   : > { %612 = vmatmul.mubr.f32.vlgmr.msra.gmra.mrb[0].mxu0 %v275_v50  ;;  %v364_v29 = vld [vmem:[%s3060_s1 + $0x248] sm:$0xff]  ;;  %v395_v30 = vld [vmem:[%s3060_s1 + $0x340] sm:$0xff]  ;;  %v382_v35 = vld [vmem:[%s3060_s1 + $0x2d8] sm:$0xff] }
  0x46   : > { %682 = vmatmul.mubr.f32.vlgmr.msra.gmra.mrb[0].mxu1 %v277_v51  ;;  %1810 = vmatpush3.bf16.msra.mxu0 %v1809_v52  ;;  %v396_v33 = vld [vmem:[%s3060_s1 + $0x348] sm:$0xff]  ;;  %v413_v36 = vld [vmem:[%s3060_s1 + $0x3d0] sm:$0xff]  ;;  %v414_v37 = vld [vmem:[%s3060_s1 + $0x3d8] sm:$0xff]  ;;  %v1825_v38 = vpack.c.bf16 %v364_v29, %v363_v25  ;;  %v1827_v40 = vpack.c.bf16 %v382_v35, %v381_v34 }
  0x47   : > { %1842 = vmatpush3.bf16.msra.mxu1 %v1841_v53  ;;  %1812 = vmatprep.subr.bf16.mxu0 %v1811_v54  ;;  %v1857_v39 = vpack.c.bf16 %v396_v33, %v395_v30  ;;  %v365_v41 = vld [vmem:[%s3060_s1 + $0x250] sm:$0xff]  ;;  %v366_v42 = vld [vmem:[%s3060_s1 + $0x258] sm:$0xff]  ;;  %v1859_v44 = vpack.c.bf16 %v414_v37, %v413_v36  ;;  %v383_v46 = vld [vmem:[%s3060_s1 + $0x2e0] sm:$0xff] }
  0x48   : > { %1844 = vmatprep.subr.bf16.mxu1 %v1843_v58  ;;  %751 = vmatprep.mubr.f32.mxu0 %v280_v26  ;;  %v397_v43 = vld [vmem:[%s3060_s1 + $0x350] sm:$0xff]  ;;  %v398_v45 = vld [vmem:[%s3060_s1 + $0x358] sm:$0xff]  ;;  %v384_v47 = vld [vmem:[%s3060_s1 + $0x2e8] sm:$0xff]  ;;  %v1829_v50 = vpack.c.bf16 %v366_v42, %v365_v41 }
  0x49   : > { %821 = vmatprep.mubr.f32.mxu1 %v282_v31  ;;  %v415_v48 = vld [vmem:[%s3060_s1 + $0x3e0] sm:$0xff]  ;;  %v416_v49 = vld [vmem:[%s3060_s1 + $0x3e8] sm:$0xff]  ;;  %v1861_v51 = vpack.c.bf16 %v398_v45, %v397_v43  ;;  %v1831_v52 = vpack.c.bf16 %v384_v47, %v383_v46  ;;  %v385_v58 = vld [vmem:[%s3060_s1 + $0x2f0] sm:$0xff] }
  0x4a   : > { %1814 = vmatpush3.bf16.msra.mxu0 %v1813_v0  ;;  %v367_v53 = vld [vmem:[%s3060_s1 + $0x260] sm:$0xff]  ;;  %v368_v54 = vld [vmem:[%s3060_s1 + $0x268] sm:$0xff]  ;;  %v1863_v56 = vpack.c.bf16 %v416_v49, %v415_v48  ;;  %v386_v59 = vld [vmem:[%s3060_s1 + $0x2f8] sm:$0xff] }
  0x4b   : > { %1846 = vmatpush3.bf16.msra.mxu1 %v1845_v1  ;;  %1816 = vmatprep.subr.bf16.mxu0 %v1815_v2  ;;  %v399_v55 = vld [vmem:[%s3060_s1 + $0x360] sm:$0xff]  ;;  %v400_v57 = vld [vmem:[%s3060_s1 + $0x368] sm:$0xff]  ;;  %v417_v60 = vld [vmem:[%s3060_s1 + $0x3f0] sm:$0xff]  ;;  %v1833_v62 = vpack.c.bf16 %v368_v54, %v367_v53  ;;  %v1835_v0 = vpack.c.bf16 %v386_v59, %v385_v58 }
  0x4c   : > { %1848 = vmatprep.subr.bf16.mxu1 %v1847_v6  ;;  %v418_v61 = vld [vmem:[%s3060_s1 + $0x3f8] sm:$0xff]  ;;  %v1865_v63 = vpack.c.bf16 %v400_v57, %v399_v55  ;;  %v369_v1 = vld [vmem:[%s3060_s1 + $0x270] sm:$0xff]  ;;  %v435_v6 = vld [vmem:[%s3060_s1 + $0x480] sm:$0xff] }
  0x4d   : > { %v370_v2 = vld [vmem:[%s3060_s1 + $0x278] sm:$0xff]  ;;  %v401_v3 = vld [vmem:[%s3060_s1 + $0x370] sm:$0xff]  ;;  %v1867_v4 = vpack.c.bf16 %v418_v61, %v417_v60  ;;  %v436_v7 = vld [vmem:[%s3060_s1 + $0x488] sm:$0xff] }
  0x4e   : > { %1818 = vmatpush3.bf16.msra.mxu0 %v1817_v12  ;;  %v402_v5 = vld [vmem:[%s3060_s1 + $0x378] sm:$0xff]  ;;  %v467_v8 = vld [vmem:[%s3060_s1 + $0x580] sm:$0xff]  ;;  %v468_v9 = vld [vmem:[%s3060_s1 + $0x588] sm:$0xff]  ;;  %v1837_v10 = vpack.c.bf16 %v370_v2, %v369_v1  ;;  %v1871_v12 = vpack.c.bf16 %v436_v7, %v435_v6 }
  0x4f   : > { %1850 = vmatpush3.bf16.msra.mxu1 %v1849_v13  ;;  %1820 = vmatprep.subr.bf16.mxu0 %v1819_v14  ;;  %v1869_v11 = vpack.c.bf16 %v402_v5, %v401_v3  ;;  %v419_v13 = vld [vmem:[%s3060_s1 + $0x400] sm:$0xff]  ;;  %v420_v14 = vld [vmem:[%s3060_s1 + $0x408] sm:$0xff]  ;;  %v1903_v16 = vpack.c.bf16 %v468_v9, %v467_v8  ;;  %v438_v19 = vld [vmem:[%s3060_s1 + $0x498] sm:$0xff] }
  0x50   : > { %1852 = vmatprep.subr.bf16.mxu1 %v1851_v18  ;;  %v451_v15 = vld [vmem:[%s3060_s1 + $0x500] sm:$0xff]  ;;  %v452_v17 = vld [vmem:[%s3060_s1 + $0x508] sm:$0xff]  ;;  %v437_v18 = vld [vmem:[%s3060_s1 + $0x490] sm:$0xff]  ;;  %v1873_v23 = vpack.c.bf16 %v420_v14, %v419_v13 }
  0x51   : > { %v469_v20 = vld [vmem:[%s3060_s1 + $0x590] sm:$0xff]  ;;  %v470_v21 = vld [vmem:[%s3060_s1 + $0x598] sm:$0xff]  ;;  %v279_v22 = vld [vmem:[%s2218_s27 + $0x20] sm:$0xff]  ;;  %v1905_v25 = vpack.c.bf16 %v452_v17, %v451_v15  ;;  %v1875_v26 = vpack.c.bf16 %v438_v19, %v437_v18 }
  0x52   : > { %1822 = vmatpush3.bf16.msra.mxu0 %v1821_v24  ;;  %v281_v24 = vld [vmem:[%s2218_s27 + $0x30] sm:$0xff]  ;;  %v1907_v30 = vpack.c.bf16 %v470_v21, %v469_v20  ;;  %v454_v31 = vld [vmem:[%s3060_s1 + $0x518] sm:$0xff]  ;;  %v440_v33 = vld [vmem:[%s3060_s1 + $0x4a8] sm:$0xff] }
  0x53   : > { %1854 = vmatpush3.bf16.msra.mxu1 %v1853_v27  ;;  %1824 = vmatprep.subr.bf16.mxu0 %v1823_v28  ;;  %v421_v27 = vld [vmem:[%s3060_s1 + $0x410] sm:$0xff]  ;;  %v422_v28 = vld [vmem:[%s3060_s1 + $0x418] sm:$0xff]  ;;  %v471_v34 = vld [vmem:[%s3060_s1 + $0x5a0] sm:$0xff] }
  0x54   : > { %1856 = vmatprep.subr.bf16.mxu1 %v1855_v32  ;;  %v453_v29 = vld [vmem:[%s3060_s1 + $0x510] sm:$0xff]  ;;  %v439_v32 = vld [vmem:[%s3060_s1 + $0x4a0] sm:$0xff]  ;;  %v472_v35 = vld [vmem:[%s3060_s1 + $0x5a8] sm:$0xff]  ;;  %v1877_v37 = vpack.c.bf16 %v422_v28, %v421_v27 }
  0x55   : > { %v284_v36 = vld [vmem:[%s2218_s27 + $0x48] sm:$0xff]  ;;  %v423_v41 = vld [vmem:[%s3060_s1 + $0x420] sm:$0xff]  ;;  %v441_v46 = vld [vmem:[%s3060_s1 + $0x4b0] sm:$0xff] }
  0x56   : > { %1826 = vmatpush3.bf16.msra.mxu0 %v1825_v38  ;;  %v286_v38 = vld [vmem:[%s2218_s27 + $0x58] sm:$0xff]  ;;  %v424_v42 = vld [vmem:[%s3060_s1 + $0x428] sm:$0xff]  ;;  %v455_v43 = vld [vmem:[%s3060_s1 + $0x520] sm:$0xff] }
  0x57   : > { %1858 = vmatpush3.bf16.msra.mxu1 %v1857_v39  ;;  %1828 = vmatprep.subr.bf16.mxu0 %v1827_v40  ;;  %v1909_v39 = vpack.c.bf16 %v454_v31, %v453_v29  ;;  %v1879_v40 = vpack.c.bf16 %v440_v33, %v439_v32  ;;  %v456_v45 = vld [vmem:[%s3060_s1 + $0x528] sm:$0xff]  ;;  %v442_v47 = vld [vmem:[%s3060_s1 + $0x4b8] sm:$0xff]  ;;  %v473_v48 = vld [vmem:[%s3060_s1 + $0x5b0] sm:$0xff] }
  0x58   : > { %1860 = vmatprep.subr.bf16.mxu1 %v1859_v44  ;;  %v1911_v44 = vpack.c.bf16 %v472_v35, %v471_v34  ;;  %v474_v49 = vld [vmem:[%s3060_s1 + $0x5b8] sm:$0xff]  ;;  %v425_v53 = vld [vmem:[%s3060_s1 + $0x430] sm:$0xff]  ;;  %v443_v58 = vld [vmem:[%s3060_s1 + $0x4c0] sm:$0xff] }
  0x59   : > { %v426_v54 = vld [vmem:[%s3060_s1 + $0x438] sm:$0xff]  ;;  %v457_v55 = vld [vmem:[%s3060_s1 + $0x530] sm:$0xff]  ;;  %v444_v59 = vld [vmem:[%s3060_s1 + $0x4c8] sm:$0xff] }
  0x5a   : > { %1830 = vmatpush3.bf16.msra.mxu0 %v1829_v50  ;;  %v1881_v50 = vpack.c.bf16 %v424_v42, %v423_v41  ;;  %v458_v57 = vld [vmem:[%s3060_s1 + $0x538] sm:$0xff]  ;;  %v475_v60 = vld [vmem:[%s3060_s1 + $0x5c0] sm:$0xff]  ;;  %v476_v61 = vld [vmem:[%s3060_s1 + $0x5c8] sm:$0xff] }
  0x5b   : > { %1862 = vmatpush3.bf16.msra.mxu1 %v1861_v51  ;;  %1832 = vmatprep.subr.bf16.mxu0 %v1831_v52  ;;  %v1913_v51 = vpack.c.bf16 %v456_v45, %v455_v43  ;;  %v1883_v52 = vpack.c.bf16 %v442_v47, %v441_v46  ;;  %v427_v1 = vld [vmem:[%s3060_s1 + $0x440] sm:$0xff]  ;;  %v428_v2 = vld [vmem:[%s3060_s1 + $0x448] sm:$0xff]  ;;  %v445_v6 = vld [vmem:[%s3060_s1 + $0x4d0] sm:$0xff] }
  0x5c   : > { %1864 = vmatprep.subr.bf16.mxu1 %v1863_v56  ;;  %v1915_v56 = vpack.c.bf16 %v474_v49, %v473_v48  ;;  %v459_v3 = vld [vmem:[%s3060_s1 + $0x540] sm:$0xff]  ;;  %v460_v5 = vld [vmem:[%s3060_s1 + $0x548] sm:$0xff]  ;;  %v446_v7 = vld [vmem:[%s3060_s1 + $0x4d8] sm:$0xff] }
  0x5d   : > { %v477_v8 = vld [vmem:[%s3060_s1 + $0x5d0] sm:$0xff]  ;;  %v478_v9 = vld [vmem:[%s3060_s1 + $0x5d8] sm:$0xff]  ;;  %v447_v18 = vld [vmem:[%s3060_s1 + $0x4e0] sm:$0xff] }
  0x5e   : > { %1834 = vmatpush3.bf16.msra.mxu0 %v1833_v62  ;;  %v1885_v62 = vpack.c.bf16 %v426_v54, %v425_v53  ;;  %v429_v13 = vld [vmem:[%s3060_s1 + $0x450] sm:$0xff]  ;;  %v430_v14 = vld [vmem:[%s3060_s1 + $0x458] sm:$0xff]  ;;  %v448_v19 = vld [vmem:[%s3060_s1 + $0x4e8] sm:$0xff] }
  0x5f   : > { %1866 = vmatpush3.bf16.msra.mxu1 %v1865_v63  ;;  %1836 = vmatprep.subr.bf16.mxu0 %v1835_v0  ;;  %v1917_v63 = vpack.c.bf16 %v458_v57, %v457_v55  ;;  %v1887_v0 = vpack.c.bf16 %v444_v59, %v443_v58  ;;  %v461_v15 = vld [vmem:[%s3060_s1 + $0x550] sm:$0xff]  ;;  %v462_v17 = vld [vmem:[%s3060_s1 + $0x558] sm:$0xff]  ;;  %v479_v20 = vld [vmem:[%s3060_s1 + $0x5e0] sm:$0xff] }
  0x60   : > { %1868 = vmatprep.subr.bf16.mxu1 %v1867_v4  ;;  %v1919_v4 = vpack.c.bf16 %v476_v61, %v475_v60  ;;  %v480_v21 = vld [vmem:[%s3060_s1 + $0x5e8] sm:$0xff]  ;;  %v463_v27 = vld [vmem:[%s3060_s1 + $0x560] sm:$0xff]  ;;  %v450_v31 = vld [vmem:[%s3060_s1 + $0x4f8] sm:$0xff] }
  0x61   : > { %v1927_v28 = vpack.c.bf16 %v480_v21, %v479_v20  ;;  %v464_v29 = vld [vmem:[%s3060_s1 + $0x568] sm:$0xff]  ;;  %v481_v32 = vld [vmem:[%s3060_s1 + $0x5f0] sm:$0xff]  ;;  %v482_v33 = vld [vmem:[%s3060_s1 + $0x5f8] sm:$0xff] }
  0x62   : > { %1838 = vmatpush3.bf16.msra.mxu0 %v1837_v10  ;;  %v1889_v10 = vpack.c.bf16 %v428_v2, %v427_v1  ;;  %v1929_v35 = vpack.c.bf16 %v464_v29, %v463_v27  ;;  %v466_v41 = vld [vmem:[%s3060_s1 + $0x578] sm:$0xff]  ;;  %v499_v42 = vld [vmem:[%s3060_s1 + $0x680] sm:$0xff]  ;;  %v500_v43 = vld [vmem:[%s3060_s1 + $0x688] sm:$0xff] }
  0x63   : > { %1870 = vmatpush3.bf16.msra.mxu1 %v1869_v11  ;;  %1872 = vmatprep.subr.bf16.mxu0 %v1871_v12  ;;  %v1921_v11 = vpack.c.bf16 %v460_v5, %v459_v3  ;;  %v1891_v12 = vpack.c.bf16 %v446_v7, %v445_v6  ;;  %v532_v45 = vld [vmem:[%s3060_s1 + $0x788] sm:$0xff]  ;;  %v1935_v48 = vpack.c.bf16 %v500_v43, %v499_v42  ;;  %v483_v49 = vld [vmem:[%s3060_s1 + $0x600] sm:$0xff]  ;;  %v501_v54 = vld [vmem:[%s3060_s1 + $0x690] sm:$0xff] }
  0x64   : > { %1904 = vmatprep.subr.bf16.mxu1 %v1903_v16  ;;  %v1923_v16 = vpack.c.bf16 %v478_v9, %v477_v8  ;;  %v516_v53 = vld [vmem:[%s3060_s1 + $0x708] sm:$0xff]  ;;  %v502_v55 = vld [vmem:[%s3060_s1 + $0x698] sm:$0xff]  ;;  %v283_v58 = vld [vmem:[%s2218_s27 + $0x40] sm:$0xff] }
  0x65   : > { %752 = vmatmul.mubr.f32.vlgmr.msra.gmra.mrb[2].mxu0 %v279_v22  ;;  %v1893_v22 = vpack.c.bf16 %v430_v14, %v429_v13  ;;  %v534_v57 = vld [vmem:[%s3060_s1 + $0x798] sm:$0xff]  ;;  %v285_v60 = vld [vmem:[%s2218_s27 + $0x50] sm:$0xff]  ;;  %v504_v5 = vld [vmem:[%s3060_s1 + $0x6a8] sm:$0xff] }
  0x66   : > { %1874 = vmatpush3.bf16.msra.mxu0 %v1873_v23  ;;  %822 = vmatmul.mubr.f32.vlgmr.msra.gmra.mrb[2].mxu1 %v281_v24  ;;  %v1925_v23 = vpack.c.bf16 %v462_v17, %v461_v15  ;;  %v1895_v24 = vpack.c.bf16 %v448_v19, %v447_v18  ;;  %v517_v1 = vld [vmem:[%s3060_s1 + $0x710] sm:$0xff]  ;;  %v518_v3 = vld [vmem:[%s3060_s1 + $0x718] sm:$0xff]  ;;  %v535_v6 = vld [vmem:[%s3060_s1 + $0x7a0] sm:$0xff] }
  0x67   : > { %1906 = vmatpush3.bf16.msra.mxu1 %v1905_v25  ;;  %1876 = vmatprep.subr.bf16.mxu0 %v1875_v26  ;;  %v431_v25 = vld [vmem:[%s3060_s1 + $0x460] sm:$0xff]  ;;  %v432_v26 = vld [vmem:[%s3060_s1 + $0x468] sm:$0xff]  ;;  %v505_v18 = vld [vmem:[%s3060_s1 + $0x6b0] sm:$0xff] }
  0x68   : > { %1908 = vmatprep.subr.bf16.mxu1 %v1907_v30  ;;  %891 = vmatprep.mubr.f32.mxu0 %v284_v36  ;;  %v449_v30 = vld [vmem:[%s3060_s1 + $0x4f0] sm:$0xff]  ;;  %v1897_v34 = vpack.c.bf16 %v432_v26, %v431_v25  ;;  %v536_v7 = vld [vmem:[%s3060_s1 + $0x7a8] sm:$0xff]  ;;  %v487_v13 = vld [vmem:[%s3060_s1 + $0x620] sm:$0xff] }
  0x69   : > { %961 = vmatprep.mubr.f32.mxu1 %v286_v38  ;;  %v1899_v36 = vpack.c.bf16 %v450_v31, %v449_v30  ;;  %v434_v38 = vld [vmem:[%s3060_s1 + $0x478] sm:$0xff]  ;;  %v288_v8 = vld [vmem:[%s2218_s27 + $0x68] sm:$0xff]  ;;  %v519_v15 = vld [vmem:[%s3060_s1 + $0x720] sm:$0xff] }
  0x6a   : > { %1878 = vmatpush3.bf16.msra.mxu0 %v1877_v37  ;;  %v433_v37 = vld [vmem:[%s3060_s1 + $0x470] sm:$0xff]  ;;  %v488_v14 = vld [vmem:[%s3060_s1 + $0x628] sm:$0xff]  ;;  %v506_v19 = vld [vmem:[%s3060_s1 + $0x6b8] sm:$0xff] }
  0x6b   : > { %1910 = vmatpush3.bf16.msra.mxu1 %v1909_v39  ;;  %1880 = vmatprep.subr.bf16.mxu0 %v1879_v40  ;;  %v465_v39 = vld [vmem:[%s3060_s1 + $0x570] sm:$0xff]  ;;  %v1931_v40 = vpack.c.bf16 %v482_v33, %v481_v32  ;;  %v1901_v46 = vpack.c.bf16 %v434_v38, %v433_v37  ;;  %v520_v17 = vld [vmem:[%s3060_s1 + $0x728] sm:$0xff]  ;;  %v538_v21 = vld [vmem:[%s3060_s1 + $0x7b8] sm:$0xff] }
  0x6c   : > { %1912 = vmatprep.subr.bf16.mxu1 %v1911_v44  ;;  %v531_v44 = vld [vmem:[%s3060_s1 + $0x780] sm:$0xff]  ;;  %v1933_v47 = vpack.c.bf16 %v466_v41, %v465_v39  ;;  %v537_v20 = vld [vmem:[%s3060_s1 + $0x7b0] sm:$0xff]  ;;  %v490_v26 = vld [vmem:[%s3060_s1 + $0x638] sm:$0xff] }
  0x6d   : > { %v489_v25 = vld [vmem:[%s3060_s1 + $0x630] sm:$0xff]  ;;  %v522_v29 = vld [vmem:[%s3060_s1 + $0x738] sm:$0xff]  ;;  %v507_v30 = vld [vmem:[%s3060_s1 + $0x6c0] sm:$0xff] }
  0x6e   : > { %1882 = vmatpush3.bf16.msra.mxu0 %v1881_v50  ;;  %v484_v50 = vld [vmem:[%s3060_s1 + $0x608] sm:$0xff]  ;;  %v521_v27 = vld [vmem:[%s3060_s1 + $0x730] sm:$0xff]  ;;  %v539_v32 = vld [vmem:[%s3060_s1 + $0x7c0] sm:$0xff] }
  0x6f   : > { %1914 = vmatpush3.bf16.msra.mxu1 %v1913_v51  ;;  %1884 = vmatprep.subr.bf16.mxu0 %v1883_v52  ;;  %v515_v51 = vld [vmem:[%s3060_s1 + $0x700] sm:$0xff]  ;;  %v1967_v52 = vpack.c.bf16 %v532_v45, %v531_v44  ;;  %v1937_v59 = vpack.c.bf16 %v484_v50, %v483_v49  ;;  %v508_v31 = vld [vmem:[%s3060_s1 + $0x6c8] sm:$0xff]  ;;  %v509_v42 = vld [vmem:[%s3060_s1 + $0x6d0] sm:$0xff] }
  0x70   : > { %1916 = vmatprep.subr.bf16.mxu1 %v1915_v56  ;;  %v533_v56 = vld [vmem:[%s3060_s1 + $0x790] sm:$0xff]  ;;  %v1969_v61 = vpack.c.bf16 %v516_v53, %v515_v51  ;;  %v540_v33 = vld [vmem:[%s3060_s1 + $0x7c8] sm:$0xff]  ;;  %v491_v37 = vld [vmem:[%s3060_s1 + $0x640] sm:$0xff] }
  0x71   : > { %v1971_v2 = vpack.c.bf16 %v534_v57, %v533_v56  ;;  %v492_v38 = vld [vmem:[%s3060_s1 + $0x648] sm:$0xff]  ;;  %v523_v39 = vld [vmem:[%s3060_s1 + $0x740] sm:$0xff]  ;;  %v510_v43 = vld [vmem:[%s3060_s1 + $0x6d8] sm:$0xff] }
  0x72   : > { %1886 = vmatpush3.bf16.msra.mxu0 %v1885_v62  ;;  %v1939_v62 = vpack.c.bf16 %v502_v55, %v501_v54  ;;  %v524_v41 = vld [vmem:[%s3060_s1 + $0x748] sm:$0xff]  ;;  %v541_v44 = vld [vmem:[%s3060_s1 + $0x7d0] sm:$0xff]  ;;  %v542_v45 = vld [vmem:[%s3060_s1 + $0x7d8] sm:$0xff] }
  0x73   : > { %1918 = vmatpush3.bf16.msra.mxu1 %v1917_v63  ;;  %1888 = vmatprep.subr.bf16.mxu0 %v1887_v0  ;;  %v485_v63 = vld [vmem:[%s3060_s1 + $0x610] sm:$0xff]  ;;  %v486_v0 = vld [vmem:[%s3060_s1 + $0x618] sm:$0xff]  ;;  %v511_v54 = vld [vmem:[%s3060_s1 + $0x6e0] sm:$0xff] }
  0x74   : > { %1920 = vmatprep.subr.bf16.mxu1 %v1919_v4  ;;  %v503_v4 = vld [vmem:[%s3060_s1 + $0x6a0] sm:$0xff]  ;;  %v1941_v9 = vpack.c.bf16 %v486_v0, %v485_v63  ;;  %v493_v49 = vld [vmem:[%s3060_s1 + $0x650] sm:$0xff]  ;;  %v494_v50 = vld [vmem:[%s3060_s1 + $0x658] sm:$0xff] }
  0x75   : > { %v525_v51 = vld [vmem:[%s3060_s1 + $0x750] sm:$0xff]  ;;  %v526_v53 = vld [vmem:[%s3060_s1 + $0x758] sm:$0xff]  ;;  %v512_v55 = vld [vmem:[%s3060_s1 + $0x6e8] sm:$0xff] }
  0x76   : > { %1890 = vmatpush3.bf16.msra.mxu0 %v1889_v10  ;;  %v290_v10 = vld [vmem:[%s2218_s27 + $0x78] sm:$0xff]  ;;  %v543_v56 = vld [vmem:[%s3060_s1 + $0x7e0] sm:$0xff]  ;;  %v544_v57 = vld [vmem:[%s3060_s1 + $0x7e8] sm:$0xff] }
  0x77   : > { %1922 = vmatpush3.bf16.msra.mxu1 %v1921_v11  ;;  %1892 = vmatprep.subr.bf16.mxu0 %v1891_v12  ;;  %v1973_v11 = vpack.c.bf16 %v518_v3, %v517_v1  ;;  %v1943_v12 = vpack.c.bf16 %v504_v5, %v503_v4  ;;  %v527_v63 = vld [vmem:[%s3060_s1 + $0x760] sm:$0xff]  ;;  %v1991_v0 = vpack.c.bf16 %v544_v57, %v543_v56  ;;  %v528_v1 = vld [vmem:[%s3060_s1 + $0x768] sm:$0xff]  ;;  %v514_v3 = vld [vmem:[%s3060_s1 + $0x6f8] sm:$0xff] }
  0x78   : > { %1924 = vmatprep.subr.bf16.mxu1 %v1923_v16  ;;  %v1975_v16 = vpack.c.bf16 %v536_v7, %v535_v6  ;;  %v545_v4 = vld [vmem:[%s3060_s1 + $0x7f0] sm:$0xff]  ;;  %v546_v5 = vld [vmem:[%s3060_s1 + $0x7f8] sm:$0xff]  ;;  %v1993_v7 = vpack.c.bf16 %v528_v1, %v527_v63  ;;  %v1437_v56 = vld [vmem:[#allocation2] ss:$0 sm:$0xff] }
  0x7a   : > { %1894 = vmatpush3.bf16.msra.mxu0 %v1893_v22  ;;  %v1945_v22 = vpack.c.bf16 %v488_v14, %v487_v13  ;;  %v530_v13 = vld [vmem:[%s3060_s1 + $0x778] sm:$0xff] }
  0x7b   : > { %1926 = vmatpush3.bf16.msra.mxu1 %v1925_v23  ;;  %1896 = vmatprep.subr.bf16.mxu0 %v1895_v24  ;;  %v1977_v23 = vpack.c.bf16 %v520_v17, %v519_v15  ;;  %v1947_v24 = vpack.c.bf16 %v506_v19, %v505_v18  ;;  %v289_v17 = vld [vmem:[%s2218_s27 + $0x70] sm:$0xff]  ;;  %v2117_v18 = vmov 0.0  }
  0x7c   : > { %1928 = vmatprep.subr.bf16.mxu1 %v1927_v28  ;;  %v1979_v28 = vpack.c.bf16 %v538_v21, %v537_v20 }
  0x7e   : > { %1898 = vmatpush3.bf16.msra.mxu0 %v1897_v34  ;;  %v1949_v34 = vpack.c.bf16 %v490_v26, %v489_v25 }
  0x7f   : > { %1930 = vmatpush3.bf16.msra.mxu1 %v1929_v35  ;;  %1900 = vmatprep.subr.bf16.mxu0 %v1899_v36  ;;  %v1981_v35 = vpack.c.bf16 %v522_v29, %v521_v27  ;;  %v1951_v36 = vpack.c.bf16 %v508_v31, %v507_v30 }
  0x80   : > { %1932 = vmatprep.subr.bf16.mxu1 %v1931_v40  ;;  %v1983_v40 = vpack.c.bf16 %v540_v33, %v539_v32 }
  0x82   : > { %1902 = vmatpush3.bf16.msra.mxu0 %v1901_v46  ;;  %v1953_v46 = vpack.c.bf16 %v492_v38, %v491_v37 }
  0x83   : > { %1934 = vmatpush3.bf16.msra.mxu1 %v1933_v47  ;;  %1936 = vmatprep.subr.bf16.mxu0 %v1935_v48  ;;  %v1985_v47 = vpack.c.bf16 %v524_v41, %v523_v39  ;;  %v1955_v48 = vpack.c.bf16 %v510_v43, %v509_v42  ;;  %v1440_v42 = vld [vmem:[%s3062_s3 + $0x8] sm:$0xff]  ;;  %v2119_v43 = vmov 0  }
  0x84   : > { %1968 = vmatprep.subr.bf16.mxu1 %v1967_v52  ;;  %v1987_v52 = vpack.c.bf16 %v542_v45, %v541_v44  ;;  %2060 = vset.pattern.permute.xlu1 %v2119_v43 }
  0x85   : > { %892 = vmatmul.mubr.f32.vlgmr.msra.gmra.mrb[4].mxu0 %v283_v58  ;;  %v1957_v58 = vpack.c.bf16 %v494_v50, %v493_v49  ;;  %2059 = vset.pattern.permute.xlu0 %v2119_v43 }
  0x86   : > { %1938 = vmatpush3.bf16.msra.mxu0 %v1937_v59  ;;  %962 = vmatmul.mubr.f32.vlgmr.msra.gmra.mrb[4].mxu1 %v285_v60  ;;  %v1989_v59 = vpack.c.bf16 %v526_v53, %v525_v51  ;;  %v1959_v60 = vpack.c.bf16 %v512_v55, %v511_v54  ;;  %v1108_v53 = vld [vmem:[%s3062_s3] sm:$0xff]  ;;  %v1439_v54 = vld [vmem:[%s3061_s2 + $0x8] sm:$0xff] }
  0x87   : > { %1970 = vmatpush3.bf16.msra.mxu1 %v1969_v61  ;;  %1940 = vmatprep.subr.bf16.mxu0 %v1939_v62  ;;  %v495_v61 = vld [vmem:[%s3060_s1 + $0x660] sm:$0xff]  ;;  %v496_v62 = vld [vmem:[%s3060_s1 + $0x668] sm:$0xff] }
  0x88   : > { %1972 = vmatprep.subr.bf16.mxu1 %v1971_v2  ;;  %1031 = vmatprep.mubr.f32.mxu0 %v288_v8  ;;  %v513_v2 = vld [vmem:[%s3060_s1 + $0x6f0] sm:$0xff]  ;;  %v1961_v6 = vpack.c.bf16 %v496_v62, %v495_v61  ;;  %v1441_v62 = vld [vmem:[#allocation2 + $0x1] ss:$0 sm:$0xff] }
  0x89   : > { %1101 = vmatprep.mubr.f32.mxu1 %v290_v10  ;;  %v1963_v8 = vpack.c.bf16 %v514_v3, %v513_v2  ;;  %v498_v10 = vld [vmem:[%s3060_s1 + $0x678] sm:$0xff]  ;;  %1204 = vperm.xlu1 %2060, %v1440_v42  }
  0x8a   : > { %1942 = vmatpush3.bf16.msra.mxu0 %v1941_v9  ;;  %v497_v9 = vld [vmem:[%s3060_s1 + $0x670] sm:$0xff] }
  0x8b   : > { %1974 = vmatpush3.bf16.msra.mxu1 %v1973_v11  ;;  %1944 = vmatprep.subr.bf16.mxu0 %v1943_v12  ;;  %v1995_v11 = vpack.c.bf16 %v546_v5, %v545_v4  ;;  %v529_v12 = vld [vmem:[%s3060_s1 + $0x770] sm:$0xff]  ;;  %v1965_v14 = vpack.c.bf16 %v498_v10, %v497_v9 }
  0x8c   : > { %1976 = vmatprep.subr.bf16.mxu1 %v1975_v16  ;;  %v1997_v15 = vpack.c.bf16 %v530_v13, %v529_v12  ;;  %v287_v16 = vld [vmem:[%s2218_s27 + $0x60] sm:$0xff]  ;;  %s1307_s27 = scalar_lea.vmem (%p2197_p5), %s3064_s5, %s1446_s13 }
  0x8e   : > { %1946 = vmatpush3.bf16.msra.mxu0 %v1945_v22 }
  0x8f   : > { %1978 = vmatpush3.bf16.msra.mxu1 %v1977_v23  ;;  %1948 = vmatprep.subr.bf16.mxu0 %v1947_v24 }
  0x90   : > { %1980 = vmatprep.subr.bf16.mxu1 %v1979_v28 }
  0x92   : > { %1950 = vmatpush3.bf16.msra.mxu0 %v1949_v34 }
  0x93   : > { %1982 = vmatpush3.bf16.msra.mxu1 %v1981_v35  ;;  %1952 = vmatprep.subr.bf16.mxu0 %v1951_v36 }
  0x94   : > { %1984 = vmatprep.subr.bf16.mxu1 %v1983_v40 }
  0x96   : > { %1954 = vmatpush3.bf16.msra.mxu0 %v1953_v46 }
  0x97   : > { %1986 = vmatpush3.bf16.msra.mxu1 %v1985_v47  ;;  %1956 = vmatprep.subr.bf16.mxu0 %v1955_v48 }
  0x98   : > { %1988 = vmatprep.subr.bf16.mxu1 %v1987_v52  ;;  %v1107_v52 = vld [vmem:[%s3061_s2] sm:$0xff] }
  0x9a   : > { %1958 = vmatpush3.bf16.msra.mxu0 %v1957_v58 }
  0x9b   : > { %1990 = vmatpush3.bf16.msra.mxu1 %v1989_v59  ;;  %1960 = vmatprep.subr.bf16.mxu0 %v1959_v60 }
  0x9c   : > { %1992 = vmatprep.subr.bf16.mxu1 %v1991_v0 }
  0x9e   : > { %1962 = vmatpush3.bf16.msra.mxu0 %v1961_v6 }
  0x9f   : > { %1994 = vmatpush3.bf16.msra.mxu1 %v1993_v7  ;;  %1964 = vmatprep.subr.bf16.mxu0 %v1963_v8 }
  0xa0   : > { %1996 = vmatprep.subr.bf16.mxu1 %v1995_v11 }
  0xa2   : > { %1966 = vmatpush3.bf16.msra.mxu0 %v1965_v14 }
  0xa3   : > { %1998 = vmatpush3.bf16.msra.mxu1 %v1997_v15  ;;  %1733 = vmatprep.subr.mxu0 %v2117_v18 }
  0xa4   : > { %1738 = vmatprep.subr.mxu1 %v2117_v18 }
  0xa5   : > { %1032 = vmatmul.mubr.f32.vlgmr.msra.gmra.mrb[6].mxu0 %v287_v16 }
  0xa6   : > { %1102 = vmatmul.mubr.f32.vlgmr.msra.gmra.mrb[6].mxu1 %v289_v17  ;;  %1735 = vmatprep.mubr.msk.f32.mxu0 %vm2118_vm1, %v2117_v18 }
  0xa7   : > { %1740 = vmatprep.mubr.msk.f32.mxu1 %vm2118_vm1, %v2117_v18 }
 0x108   : > { %v1205_v63 = vpop.permute.xlu1 %1204 }
 0x109   : > { %v1213_v0 = vmul.f32 %v1441_v62, %v1205_v63 }
 0x118   : > { %v1481_v19 = vpop.f32.mrb[0].mxu0 }
 0x119   : > { %v1516_v20 = vpop.f32.mrb[0].mxu1  ;;  %v1482_v21 = vpop.f32.mrb[1].mxu0 }
 0x11a   : > { %v1483_v22 = vadd.f32 %v1482_v21, %v1481_v19  ;;  %v1517_v23 = vpop.f32.mrb[1].mxu1 }
 0x11b   : > { %v1518_v24 = vadd.f32 %v1517_v23, %v1516_v20 }
 0x11d   : > { %v684_v25 = vadd.f32 %v1518_v24, %v1483_v22 }
 0x138   : > { %v1551_v26 = vpop.f32.mrb[2].mxu0 }
 0x139   : > { %v1552_v27 = vpop.f32.mrb[3].mxu0  ;;  %v1586_v28 = vpop.f32.mrb[2].mxu1 }
 0x13a   : > { %v1553_v29 = vadd.f32 %v1552_v27, %v1551_v26  ;;  %v1587_v30 = vpop.f32.mrb[3].mxu1 }
 0x13b   : > { %v1588_v31 = vadd.f32 %v1587_v30, %v1586_v28 }
 0x13c   : > { %v754_v32 = vadd.f32 %v1553_v29, %v684_v25 }
 0x13e   : > { %v824_v33 = vadd.f32 %v1588_v31, %v754_v32 }
 0x158   : > { %v1621_v34 = vpop.f32.mrb[4].mxu0 }
 0x159   : > { %v1622_v35 = vpop.f32.mrb[5].mxu0  ;;  %v1656_v36 = vpop.f32.mrb[4].mxu1 }
 0x15a   : > { %v1623_v37 = vadd.f32 %v1622_v35, %v1621_v34  ;;  %v1657_v38 = vpop.f32.mrb[5].mxu1 }
 0x15b   : > { %v1658_v39 = vadd.f32 %v1657_v38, %v1656_v36 }
 0x15c   : > { %v894_v40 = vadd.f32 %v1623_v37, %v824_v33 }
 0x15e   : > { %v964_v41 = vadd.f32 %v1658_v39, %v894_v40 }
 0x178   : > { %v1691_v44 = vpop.f32.mrb[6].mxu0 }
 0x179   : > { %v1692_v45 = vpop.f32.mrb[7].mxu0  ;;  %v1726_v46 = vpop.f32.mrb[6].mxu1 }
 0x17a   : > { %v1693_v47 = vadd.f32 %v1692_v45, %v1691_v44  ;;  %v1727_v48 = vpop.f32.mrb[7].mxu1 }
 0x17b   : > { %v1728_v49 = vadd.f32 %v1727_v48, %v1726_v46 }
 0x17c   : > { %v1034_v50 = vadd.f32 %v1693_v47, %v964_v41 }
 0x17e   : > { %v1104_v51 = vadd.f32 %v1728_v49, %v1034_v50 }
 0x180   : > { %1215 = vrot.lane.b32.xlu0 %v1104_v51, %s2120_s28  ;;  %1734 = vmatpush3.msra.mxu0 %v1104_v51 }
 0x181   : > { %1736 = vmatmul.mubr.msk.f32.vlgmr.msra.gmra.mrb[8].mxu0 %vm1122_vm2, %v1107_v52 }
 0x184   : > { %1112 = vperm.xlu0 %2059, %v1108_v53  }
 0x1f2   : > { %v1216_v55 = vpop.permute.xlu0 %1215 }
 0x1f3   : > { %1739 = vmatpush3.msra.mxu1 %v1216_v55 }
 0x1f4   : > { %1741 = vmatmul.mubr.msk.f32.vlgmr.msra.gmra.mrb[8].mxu1 %vm1122_vm2, %v1439_v54 }
 0x203   : > { %v1113_v57 = vpop.permute.xlu0 %1112 }
 0x204   : > { %v1121_v58 = vmul.f32 %v1437_v56, %v1113_v57 }
 0x254   : > { %v1192_v59 = vpop.f32.mrb[8].mxu0 }
 0x255   : > { %v1193_v60 = vadd.f32 %v1192_v59, %v1121_v58  ;;  %v1737_v61 = vpop.f32.mrb[9].mxu0 }
 0x257   : > { %1291 = vst.msk [vmem:[%s2224_s9] sm:$0xff] %vm1122_vm2, %v1193_v60 }
 0x258   : > { %1295 = vst.msk [vmem:[#allocation2 - $0x7] sm:$0x80] %vm1294_vm3, %v1193_v60 }
 0x25e   : > { %v1337_v4 = vld [vmem:[%s2224_s9] sm:$0xff] (%p2197_p5) }
 0x25f   : > { %1338 = vst [vmem:[%s1307_s27] sm:$0xff] (%p2197_p5), %v1337_v4 }
 0x2c5   : > { %1303 = sbr.rel (!%p2197_p5) target bundleno = 723 (0x2d3), region = 48 }
 0x2c7   : > { %v1287_v1 = vpop.f32.mrb[8].mxu1 }
 0x2c8   : > { %v1288_v2 = vadd.f32 %v1287_v1, %v1213_v0  ;;  %v1742_v3 = vpop.f32.mrb[9].mxu1 }
 0x2ca   : > { %1443 = vst.msk [vmem:[%s2224_s9 + $0x8] sm:$0xff] %vm1122_vm2, %v1288_v2 }
 0x2cb   : > { %1296 = vst.msk [vmem:[#allocation2 - $0x6] sm:$0x80] %vm1294_vm3, %v1288_v2 }
 0x2d1   : > { %v1339_v5 = vld [vmem:[%s2224_s9 + $0x8] sm:$0xff] }
 0x2d2   : > { %1340 = vst [vmem:[%s1307_s27 + $0x10] sm:$0xff] %v1339_v5 }
 0x2d3 PF: > { %s15_s24 = sadd.s32 1, %s2115_s24   ;;  %s3066_s18 = smov %s2095_s19 }
 0x2d4   : > { %p12_p13 = scmp.ge.s32.totalorder %s15_s24, 6   ;;  %s3067_s19 = smov %s2208_s8 }
 0x2d5   : > { %s3068_s20 = smov %s2107_s22  ;;  %s3069_s21 = smov %s2111_s23 }
 0x2d6   : > { %s3070_s22 = smov %s3073_s25  ;;  %s3071_s23 = smov %s3077_s26 }
 0x2d7   :  { %14 = sbr.rel (!%p12_p13) target bundleno = 4 (0x4), region = 119 }

</bundles_post_ra>
